<compile_context>
chip_gen: v6e
topology: v6e:2x2x1
jax: 0.10.0
libtpu: 0.0.40
codegen_flags: <defaults>
</compile_context>

<pallas_src>
import functools

import jax
import jax.numpy as jnp
from jax import lax
from jax.experimental import pallas as pl
from jax.experimental.pallas import tpu as pltpu

_VMEM_LIMIT = 32 * 1024 * 1024  # safe on all generations; tune per chip for large N


def _round_up(x, m):
    return ((x + m - 1) // m) * m


# --------------------------------------------------------------------------- kernels

def _proj_kernel(x_ref, w_ref, asrc_ref, adst_ref, xw_ref, alsrc_ref, aldst_ref):
    """Per-layer projection + per-node attention coefficients (hoisted, runs once).

    x_ref:     [N, FinPad]  bf16 node features (lane-padded)
    w_ref:     [FinPad, HCpad] bf16 projection for all heads (one MXU matmul)
    asrc_ref:  [H, HCpad]   bf16 block-diagonal att_src rows
    adst_ref:  [H, HCpad]   bf16 block-diagonal att_dst rows
    xw_ref:    [N, HCpad]   bf16 projected features (reused by every dst tile)
    alsrc_ref: [H, N]       f32  alpha_src per head / per source node
    aldst_ref: [N, H]       f32  alpha_dst per head / per dest node
    """
    xw = jnp.dot(x_ref[...], w_ref[...], preferred_element_type=jnp.float32)
    xw_bf = xw.astype(jnp.bfloat16)
    xw_ref[...] = xw_bf
    alsrc_ref[...] = lax.dot_general(asrc_ref[...], xw_bf, (((1,), (1,)), ((), ())),
                                     preferred_element_type=jnp.float32)
    aldst_ref[...] = lax.dot_general(xw_bf, adst_ref[...], (((1,), (1,)), ((), ())),
                                     preferred_element_type=jnp.float32)


def _gat_attn_kernel(xw_ref, alsrc_ref, aldst_ref, maskb_ref, bias_ref, *rest,
                     heads, channels, concat, fuse_ln):
    """Attention + aggregation (+ head-mean, bias, LayerNorm, ELU) for one dst tile.

    xw_ref:    [N, HCpad]  bf16 projected source features (constant block index)
    alsrc_ref: [H, N]      f32  per-source alpha_src
    aldst_ref: [tn, H]     f32  per-dest alpha_dst rows of this tile
    maskb_ref: [tn, N]     f32  additive adjacency mask (0 on edges/self-loops, -1e30)
    bias_ref:  [1, OutPad] f32
    optional mix_ref [HCpad, OutPad] (head-mean fold, concat=False)
    optional gamma_ref, beta_ref [1, OutPad] (LayerNorm affine)
    out_ref:   [tn, OutPad] lane-dense output slab (bf16 hidden / f32 final)
    """
    k = 0
    mix_ref = None
    if not concat:
        mix_ref = rest[k]; k += 1
    if fuse_ln:
        gamma_ref, beta_ref = rest[k], rest[k + 1]; k += 2
    out_ref = rest[k]

    xw = xw_ref[...]                                       # [N, HCpad] bf16
    alsrc = alsrc_ref[...]                                 # [H, N]
    aldst = aldst_ref[...]                                 # [tn, H]
    maskb = maskb_ref[...]                                 # [tn, N]

    tn = maskb.shape[0]
    hcp = xw.shape[1]
    col = lax.broadcasted_iota(jnp.int32, (1, hcp), 1)

    acc = jnp.zeros((tn, hcp), jnp.float32)
    for h in range(heads):
        e = aldst[:, h:h + 1] + alsrc[h:h + 1, :]          # [tn, N]
        e = jnp.where(e > 0, e, 0.2 * e)                   # LeakyReLU(0.2)
        e = e + maskb                                      # additive adjacency mask
        m = jnp.max(e, axis=-1, keepdims=True)
        p = jnp.exp(e - m)                                 # masked entries underflow to 0
        denom = jnp.sum(p, axis=-1, keepdims=True)         # [tn, 1]
        # Full-lane-width RHS: zero out every column that does not belong to head h,
        # so the matmul directly lands in the concat layout (no 16-lane slices).
        head_cols = (col >= h * channels) & (col < (h + 1) * channels)
        xw_h = jnp.where(head_cols, xw, jnp.zeros_like(xw))
        num = jnp.dot(p.astype(jnp.bfloat16), xw_h,
                      preferred_element_type=jnp.float32)  # [tn, HCpad]
        acc = acc + num * (1.0 / denom)                    # exact normalize after agg

    if concat:
        y = acc
    else:
        # mean over heads as one lane-dense fold matmul (also re-pads to OutPad)
        y = jnp.dot(acc, mix_ref[...], preferred_element_type=jnp.float32)

    y = y + bias_ref[...]

    if fuse_ln:
        # LayerNorm(eps=1e-5) over the H*C valid columns only.  Padded columns of y
        # are exactly zero, so sum/sum-of-squares over the full padded width divided
        # by the true width give the exact statistics; padded gamma/beta are zero so
        # the padded output columns stay zero for the next layer.
        inv_hc = 1.0 / float(heads * channels)
        mu = jnp.sum(y, axis=-1, keepdims=True) * inv_hc
        ms = jnp.sum(y * y, axis=-1, keepdims=True) * inv_hc
        yn = (y - mu) * lax.rsqrt(ms - mu * mu + 1e-5)
        y = yn * gamma_ref[...] + beta_ref[...]
        y = jnp.where(y > 0, y, jnp.expm1(y))              # ELU(alpha=1)

    out_ref[...] = y.astype(out_ref.dtype)


# --------------------------------------------------------------------------- wrappers

def gat_project(x_bf, conv):
    """Once-per-layer projection + attention coefficients (no per-dst-tile recompute)."""
    N, finp = x_bf.shape
    H = conv["heads"]
    hcp = conv["W"].shape[1]
    # TODO(synk): for large graphs tile this over rows of N instead of one block.
    return pl.pallas_call(
        _proj_kernel,
        grid=(1,),
        in_specs=[pl.BlockSpec((N, finp), lambda i: (0, 0)),
                  pl.BlockSpec((finp, hcp), lambda i: (0, 0)),
                  pl.BlockSpec((H, hcp), lambda i: (0, 0)),
                  pl.BlockSpec((H, hcp), lambda i: (0, 0))],
        out_specs=(pl.BlockSpec((N, hcp), lambda i: (0, 0)),
                   pl.BlockSpec((H, N), lambda i: (0, 0)),
                   pl.BlockSpec((N, H), lambda i: (0, 0))),
        out_shape=(jax.ShapeDtypeStruct((N, hcp), jnp.bfloat16),
                   jax.ShapeDtypeStruct((H, N), jnp.float32),
                   jax.ShapeDtypeStruct((N, H), jnp.float32)),
        compiler_params=pltpu.CompilerParams(vmem_limit_bytes=_VMEM_LIMIT),
    )(x_bf, conv["W"], conv["att_src_rows"], conv["att_dst_rows"])


def gat_attention(xw, alsrc, aldst, mask_bias, conv, gamma=None, beta=None,
                  out_dtype=jnp.bfloat16):
    N, hcp = xw.shape
    H, C = conv["heads"], conv["channels"]
    concat = conv["concat"]
    outp = conv["bias"].shape[1]
    fuse_ln = gamma is not None

    # Two dst-row tiles when possible (both v7x TensorCores get work); a single tile
    # otherwise.  Each tile keeps the sublane dim a multiple of 8.
    nt = 2 if (N % 16 == 0 and N >= 16) else 1
    tn = N // nt
    # TODO(synk): for large graphs derive nt/tn from the VMEM budget and tile the src
    # axis with an online (flash-style) softmax instead of keeping full xw and a
    # [tn, N] logit block resident; also replace the dense f32 mask by int8/CSR.

    in_specs = [
        pl.BlockSpec((N, hcp), lambda i: (0, 0)),      # projected source features
        pl.BlockSpec((H, N), lambda i: (0, 0)),        # alpha_src per head
        pl.BlockSpec((tn, H), lambda i: (i, 0)),       # alpha_dst rows of this tile
        pl.BlockSpec((tn, N), lambda i: (i, 0)),       # additive mask rows
        pl.BlockSpec((1, outp), lambda i: (0, 0)),     # bias
    ]
    args = [xw, alsrc, aldst, mask_bias, conv["bias"]]
    if not concat:
        in_specs.append(pl.BlockSpec((hcp, outp), lambda i: (0, 0)))
        args.append(conv["head_mix"])
    if fuse_ln:
        in_specs += [pl.BlockSpec((1, outp), lambda i: (0, 0)),
                     pl.BlockSpec((1, outp), lambda i: (0, 0))]
        args += [gamma, beta]

    kernel = functools.partial(_gat_attn_kernel, heads=H, channels=C,
                               concat=concat, fuse_ln=fuse_ln)
    return pl.pallas_call(
        kernel,
        grid=(nt,),
        in_specs=in_specs,
        out_specs=pl.BlockSpec((tn, outp), lambda i: (i, 0)),
        out_shape=jax.ShapeDtypeStruct((N, outp), out_dtype),
        compiler_params=pltpu.CompilerParams(
            dimension_semantics=("parallel",),
            vmem_limit_bytes=_VMEM_LIMIT),
    )(*args)


def gat_conv_fused(x_bf, conv, mask_bias, gamma=None, beta=None,
                   out_dtype=jnp.bfloat16):
    xw, alsrc, aldst = gat_project(x_bf, conv)
    return gat_attention(xw, alsrc, aldst, mask_bias, conv, gamma, beta, out_dtype)


def build_mask_bias(edge_index, num_nodes):
    """edge_index: [2, E] (src, dst) -> additive mask: 0 on edges/self-loops, -1e30 else.
    Note: collapses duplicate (src, dst) edges into one (PyG counts duplicates twice)."""
    src, dst = edge_index[0], edge_index[1]
    mb = jnp.full((num_nodes, num_nodes), -1e30, jnp.float32)
    mb = mb.at[dst, src].set(0.0)
    diag = jnp.arange(num_nodes)
    mb = mb.at[diag, diag].set(0.0)
    return mb


# --------------------------------------------------------------------------- params

def make_gatconv_params(key, fin, c, heads, concat):
    kw, ks, kd = jax.random.split(key, 3)
    hc = heads * c
    fin_pad = _round_up(fin, 128)
    hc_pad = _round_up(hc, 128)
    out_pad = hc_pad if concat else _round_up(c, 128)

    std_w = (2.0 / (fin + hc)) ** 0.5
    W = std_w * jax.random.normal(kw, (fin, hc), jnp.float32)
    W_pad = jnp.zeros((fin_pad, hc_pad), jnp.float32).at[:fin, :hc].set(W)

    std_a = (2.0 / (1 + c)) ** 0.5
    att_src = std_a * jax.random.normal(ks, (heads, c), jnp.float32)
    att_dst = std_a * jax.random.normal(kd, (heads, c), jnp.float32)
    asrc_rows = jnp.zeros((heads, hc_pad), jnp.float32)
    adst_rows = jnp.zeros((heads, hc_pad), jnp.float32)
    for h in range(heads):
        asrc_rows = asrc_rows.at[h, h * c:(h + 1) * c].set(att_src[h])
        adst_rows = adst_rows.at[h, h * c:(h + 1) * c].set(att_dst[h])

    p = {"W": W_pad.astype(jnp.bfloat16),                  # bf16 weights (HBM/VMEM halved)
         "att_src_rows": asrc_rows.astype(jnp.bfloat16),
         "att_dst_rows": adst_rows.astype(jnp.bfloat16),
         "bias": jnp.zeros((1, out_pad), jnp.float32),     # PyG init: zeros
         "heads": heads, "channels": c, "concat": concat}
    if not concat:
        mix = jnp.zeros((hc_pad, out_pad), jnp.float32)    # head-mean fold matrix
        for h in range(heads):
            mix = mix.at[h * c:(h + 1) * c, :c].set(jnp.eye(c, dtype=jnp.float32) / heads)
        p["head_mix"] = mix
    return p


def make_gat_params(key, hidden_channels, out_channels, num_layers, heads):
    keys = jax.random.split(key, num_layers)
    convs = [make_gatconv_params(keys[0], 128, hidden_channels, heads, True)]
    for li in range(num_layers - 2):
        convs.append(make_gatconv_params(keys[1 + li], heads * hidden_channels,
                                         hidden_channels, heads, True))
    convs.append(make_gatconv_params(keys[-1], heads * hidden_channels,
                                     out_channels, heads, False))
    hc = heads * hidden_channels
    hc_pad = _round_up(hc, 128)
    gamma = jnp.zeros((1, hc_pad), jnp.float32).at[:, :hc].set(1.0)  # zeros in padded cols
    beta = jnp.zeros((1, hc_pad), jnp.float32)
    norms = [{"gamma": gamma, "beta": beta} for _ in range(num_layers - 1)]
    return {"convs": convs, "norms": norms}


def gat_forward(params, x, edge_index):
    N = x.shape[0]
    mask_bias = build_mask_bias(edge_index, N)
    num_layers = len(params["convs"])
    h = x.astype(jnp.bfloat16)                             # bf16 activations between layers
    for i, conv in enumerate(params["convs"]):
        if i != num_layers - 1:
            ln = params["norms"][i]
            # conv + bias + LayerNorm + ELU fused; lane-dense bf16 output feeds next layer.
            h = gat_conv_fused(h, conv, mask_bias, ln["gamma"], ln["beta"],
                               out_dtype=jnp.bfloat16)
            # TODO(synk): F.dropout(p=0.5) is identity in eval mode; training-mode RNG
            # dropout (pltpu.prng_*) not implemented here.
        else:
            h = gat_conv_fused(h, conv, mask_bias, out_dtype=jnp.float32)
    return h[:, :params["convs"][-1]["channels"]]          # strip lane padding


# --------------------------------------------------------------------------- main

if __name__ == "__main__":
    N, E = 64, 256                 # nodes, edges
    hidden_channels, out_channels, num_layers, heads = 16, 8, 3, 2

    key = jax.random.PRNGKey(0)
    k_x, k_e, k_p = jax.random.split(key, 3)

    # Node features: first conv is hard-coded GATConv(128, ...), so Fin = 128.
    x = jax.random.normal(k_x, (N, 128), jnp.float32)

    # Random graph without duplicate edges (dense-mask conversion is then exact).
    flat = jax.random.choice(k_e, N * N, shape=(E,), replace=False)
    edge_index = jnp.stack([flat % N, flat // N]).astype(jnp.int32)            # [2, E]

    params = make_gat_params(k_p, hidden_channels, out_channels, num_layers, heads)

    out = gat_forward(params, x, edge_index)                                   # [N, out_channels]
    jax.block_until_ready(out)
    assert out.shape == (N, out_channels), out.shape
    print("KERNEL_OK")
</pallas_src>

<mosaic_0001>
module attributes {stable_mosaic.version = 11 : i64} {
  func.func @_proj_kernel(%arg0: i32, %arg1: memref<64x128xbf16, #tpu.memory_space<vmem>>, %arg2: memref<128x128xbf16, #tpu.memory_space<vmem>>, %arg3: memref<2x128xbf16, #tpu.memory_space<vmem>>, %arg4: memref<2x128xbf16, #tpu.memory_space<vmem>>, %arg5: memref<64x128xbf16, #tpu.memory_space<vmem>>, %arg6: memref<2x64xf32, #tpu.memory_space<vmem>>, %arg7: memref<64x2xf32, #tpu.memory_space<vmem>>) attributes {dimension_semantics = [#tpu.dimension_semantics<arbitrary>], iteration_bounds = array<i64: 1>, scalar_prefetch = 0 : i64, scratch_operands = 0 : i64, tpu.core_type = #tpu.core_type<tc>, window_params = [{pipeline_mode = #tpu.pipeline_mode<synchronous>, transform_indices = @transform_0, window_bounds = array<i64: 64, 128>}, {pipeline_mode = #tpu.pipeline_mode<synchronous>, transform_indices = @transform_1, window_bounds = array<i64: 128, 128>}, {pipeline_mode = #tpu.pipeline_mode<synchronous>, transform_indices = @transform_2, window_bounds = array<i64: 2, 128>}, {pipeline_mode = #tpu.pipeline_mode<synchronous>, transform_indices = @transform_3, window_bounds = array<i64: 2, 128>}, {pipeline_mode = #tpu.pipeline_mode<synchronous>, transform_indices = @transform_4, window_bounds = array<i64: 64, 128>}, {pipeline_mode = #tpu.pipeline_mode<synchronous>, transform_indices = @transform_5, window_bounds = array<i64: 2, 64>}, {pipeline_mode = #tpu.pipeline_mode<synchronous>, transform_indices = @transform_6, window_bounds = array<i64: 64, 2>}]} {
    %c0 = arith.constant 0 : index
    %c0_0 = arith.constant 0 : index
    %0 = vector.load %arg1[%c0, %c0_0] : memref<64x128xbf16, #tpu.memory_space<vmem>>, vector<64x128xbf16>
    %c0_1 = arith.constant 0 : index
    %c0_2 = arith.constant 0 : index
    %1 = vector.load %arg2[%c0_1, %c0_2] : memref<128x128xbf16, #tpu.memory_space<vmem>>, vector<128x128xbf16>
    %cst = arith.constant dense<0.000000e+00> : vector<64x128xf32>
    %2 = tpu.matmul %0, %1, %cst {dimension_numbers = #tpu.dot_dimension_numbers<[1], [0], [0], [1], [0, 0, 1, 1], [], []>} : vector<64x128xbf16>, vector<128x128xbf16>, vector<64x128xf32> -> vector<64x128xf32>
    %3 = arith.truncf %2 : vector<64x128xf32> to vector<64x128xbf16>
    %c0_3 = arith.constant 0 : index
    %c0_4 = arith.constant 0 : index
    %4 = vector.load %arg5[%c0_3, %c0_4] : memref<64x128xbf16, #tpu.memory_space<vmem>>, vector<64x128xbf16>
    tpu.vector_store %arg5[%c0_3, %c0_4], %3 {strides = array<i32>} : memref<64x128xbf16, #tpu.memory_space<vmem>>, vector<64x128xbf16>,
    %c0_5 = arith.constant 0 : index
    %c0_6 = arith.constant 0 : index
    %5 = vector.load %arg3[%c0_5, %c0_6] : memref<2x128xbf16, #tpu.memory_space<vmem>>, vector<2x128xbf16>
    %cst_7 = arith.constant dense<0.000000e+00> : vector<2x64xf32>
    %6 = tpu.matmul %5, %3, %cst_7 {dimension_numbers = #tpu.dot_dimension_numbers<[1], [1], [0], [0], [0, 0, 1, 0], [], []>} : vector<2x128xbf16>, vector<64x128xbf16>, vector<2x64xf32> -> vector<2x64xf32>
    %c0_8 = arith.constant 0 : index
    %c0_9 = arith.constant 0 : index
    %7 = vector.load %arg6[%c0_8, %c0_9] : memref<2x64xf32, #tpu.memory_space<vmem>>, vector<2x64xf32>
    tpu.vector_store %arg6[%c0_8, %c0_9], %6 {strides = array<i32>} : memref<2x64xf32, #tpu.memory_space<vmem>>, vector<2x64xf32>,
    %c0_10 = arith.constant 0 : index
    %c0_11 = arith.constant 0 : index
    %8 = vector.load %arg4[%c0_10, %c0_11] : memref<2x128xbf16, #tpu.memory_space<vmem>>, vector<2x128xbf16>
    %cst_12 = arith.constant dense<0.000000e+00> : vector<64x2xf32>
    %9 = tpu.matmul %3, %8, %cst_12 {dimension_numbers = #tpu.dot_dimension_numbers<[1], [1], [0], [0], [0, 0, 1, 0], [], []>} : vector<64x128xbf16>, vector<2x128xbf16>, vector<64x2xf32> -> vector<64x2xf32>
    %c0_13 = arith.constant 0 : index
    %c0_14 = arith.constant 0 : index
    %10 = vector.load %arg7[%c0_13, %c0_14] : memref<64x2xf32, #tpu.memory_space<vmem>>, vector<64x2xf32>
    tpu.vector_store %arg7[%c0_13, %c0_14], %9 {strides = array<i32>} : memref<64x2xf32, #tpu.memory_space<vmem>>, vector<64x2xf32>,
    return
  }
  func.func @transform_0(%arg0: i32) -> (i32, i32) {
    %c0_i32 = arith.constant 0 : i32
    %c0_i32_0 = arith.constant 0 : i32
    %c0_i32_1 = arith.constant 0 : i32
    return %c0_i32, %c0_i32_0 : i32, i32
  }
  func.func @transform_1(%arg0: i32) -> (i32, i32) {
    %c0_i32 = arith.constant 0 : i32
    %c0_i32_0 = arith.constant 0 : i32
    %c0_i32_1 = arith.constant 0 : i32
    return %c0_i32, %c0_i32_0 : i32, i32
  }
  func.func @transform_2(%arg0: i32) -> (i32, i32) {
    %c0_i32 = arith.constant 0 : i32
    %c0_i32_0 = arith.constant 0 : i32
    %c0_i32_1 = arith.constant 0 : i32
    return %c0_i32, %c0_i32_0 : i32, i32
  }
  func.func @transform_3(%arg0: i32) -> (i32, i32) {
    %c0_i32 = arith.constant 0 : i32
    %c0_i32_0 = arith.constant 0 : i32
    %c0_i32_1 = arith.constant 0 : i32
    return %c0_i32, %c0_i32_0 : i32, i32
  }
  func.func @transform_4(%arg0: i32) -> (i32, i32) {
    %c0_i32 = arith.constant 0 : i32
    %c0_i32_0 = arith.constant 0 : i32
    %c0_i32_1 = arith.constant 0 : i32
    return %c0_i32, %c0_i32_0 : i32, i32
  }
  func.func @transform_5(%arg0: i32) -> (i32, i32) {
    %c0_i32 = arith.constant 0 : i32
    %c0_i32_0 = arith.constant 0 : i32
    %c0_i32_1 = arith.constant 0 : i32
    return %c0_i32, %c0_i32_0 : i32, i32
  }
  func.func @transform_6(%arg0: i32) -> (i32, i32) {
    %c0_i32 = arith.constant 0 : i32
    %c0_i32_0 = arith.constant 0 : i32
    %c0_i32_1 = arith.constant 0 : i32
    return %c0_i32, %c0_i32_0 : i32, i32
  }
}

</mosaic_0001>

<bundles_post_ra>
// kernel: tpu_custom_call.1
= control target key start
LH: loop header
LB: loop body
LE: loop exit
PB: predicated region body
PF: predicated region fallthrough
CT: control target
= control target key end

     0   :  { %12 = vsyncpa [#allocation3], 0  ;;  %s735_s0 = inlined_call_operand.hbm [shape: bf16[64,128], index: 0, kind: input, shape index: {}]   ;;  %s736_s1 = inlined_call_operand.hbm [shape: bf16[128,128], index: 1, kind: input, shape index: {}]   ;;  %s737_s2 = inlined_call_operand.vmem [shape: bf16[2,128], index: 2, kind: input, shape index: {}]   ;;  %s738_s3 = inlined_call_operand.vmem [shape: bf16[2,128], index: 3, kind: input, shape index: {}]   ;;  %s739_s4 = inlined_call_operand.hbm [shape: bf16[64,128], index: 4, kind: output, shape index: {0}]   ;;  %s740_s5 = inlined_call_operand.hbm [shape: f32[2,64], index: 5, kind: output, shape index: {1}]   ;;  %s741_s6 = inlined_call_operand.vmem [shape: f32[64,2], index: 6, kind: output, shape index: {2}]  }
   0x1   :  { %13 = vsyncpa [#allocation6], 0 }
   0x2   :  { %14 = vsyncpa [#allocation4], 0 }
   0x3   :  { %15 = vsyncpa [#allocation9], 0  ;;  %s633_s21 = smov [#allocation2]  }
   0x4   :  { %s21_s22 = sshll.u32 %s633_s21, 4  ;;  %s22_s22 = int_to_ptr.vmem [resolvable:$true] %s21_s22 }
   0x5   :  { %s553_s23 = scalar_lea.vmem %s22_s22, 512  ;;  %p558_p1 = scmp.lt.s32.totalorder %s22_s22, %s22_s22 }
   0x6   :  { %p554_p0 = scmp.ne.s32.totalorder %s22_s22, %s553_s23  ;;  %p559_p2 = scmp.lt.s32.totalorder %s553_s23, %s553_s23 }
   0x8   :  { %p560_p3 = por %p559_p2, %p558_p1 }
   0xa   :  { %p561_p4 = pnand %p560_p3, %p554_p0 }
   0xc   :  { %564 = shalt.err (!%p561_p4)
}
   0xd   :  { %s634_s24 = smov 64   ;;  %s635_s25 = smov 4  }
   0xe   :  { %27 = dma.hbm_to_vmem [thread:$0]  %s735_s0, 512, %s22_s22, [#allocation3], %s634_s24, %s634_s24, %s635_s25  }
   0xf   :  { %s636_s28 = smov [#allocation5]  }
  0x10   :  { %s33_s29 = sshll.u32 %s636_s28, 4  ;;  %s34_s29 = int_to_ptr.vmem [resolvable:$true] %s33_s29 }
  0x11   :  { %s573_s30 = scalar_lea.vmem %s34_s29, 1024  ;;  %p578_p6 = scmp.lt.s32.totalorder %s34_s29, %s34_s29 }
  0x12   :  { %p574_p5 = scmp.ne.s32.totalorder %s34_s29, %s573_s30  ;;  %p579_p7 = scmp.lt.s32.totalorder %s573_s30, %s573_s30 }
  0x14   :  { %p580_p8 = por %p579_p7, %p578_p6 }
  0x16   :  { %p581_p9 = pnand %p580_p8, %p574_p5 }
  0x18   :  { %584 = shalt.err (!%p581_p9)
}
  0x19   :  { %39 = dma.hbm_to_vmem [thread:$0]  %s736_s1, 1024, %s34_s29, [#allocation6], %s634_s24, %s634_s24, %s635_s25  }
  0x1a   :  { %625 = dma.done.wait [#allocation3], 512  }
  0x1b   :  { %626 = vsyncadd [#allocation3], 4294966784 }
  0x1c   :  { %627 = dma.done.wait [#allocation6], 1024  }
  0x1d   :  { %628 = vsyncadd [#allocation6], 4294966272  ;;  %v533_v0 = vld [vmem:[#allocation5 + $0x38] sm:$0xff]   ;;  %v534_v1 = vld [vmem:[#allocation5 + $0x30] sm:$0xff]   ;;  %v637_v12 = vmov 0.0   ;;  %vm638_vm0 = vmmov 0  }
  0x1e   :  { %479 = vmatprep.subr.bf16.mxu0 %v533_v0  ;;  %v535_v2 = vld [vmem:[#allocation5 + $0x28] sm:$0xff]   ;;  %v536_v3 = vld [vmem:[#allocation5 + $0x20] sm:$0xff]   ;;  %v537_v5 = vld [vmem:[#allocation5 + $0x18] sm:$0xff]   ;;  %503 = vmatprep.subr.bf16.mxu1 %v637_v12  ;;  %s639_s11 = smov [#allocation7]  }
  0x1f   :  { %480 = vmatpush3.bf16.msra.mxu0 %v533_v0  ;;  %v541_v4 = vld [vmem:[#allocation2] sm:$0xff]   ;;  %v538_v6 = vld [vmem:[#allocation5 + $0x10] sm:$0xff]   ;;  %v539_v7 = vld [vmem:[#allocation5 + $0x8] sm:$0xff]   ;;  %511 = vmatprep.mubr.msk.bf16.mxu1 %vm638_vm0, %v637_v12  ;;  %s375_s12 = sshll.u32 %s639_s11, 4  ;;  %s376_s12 = int_to_ptr.vmem [resolvable:$true] %s375_s12 }
  0x20   :  { %481 = vmatprep.subr.bf16.mxu0 %v534_v1  ;;  %495 = vmatprep.mubr.bf16.mxu0 %v541_v4  ;;  %v540_v8 = vld [vmem:[#allocation5] sm:$0xff]   ;;  %v542_v9 = vld [vmem:[#allocation2 + $0x8] sm:$0xff]   ;;  %v543_v10 = vld [vmem:[#allocation2 + $0x10] sm:$0xff]   ;;  %s585_s13 = scalar_lea.vmem %s376_s12, 512  ;;  %p590_p11 = scmp.lt.s32.totalorder %s376_s12, %s376_s12 }
  0x21   :  { %v544_v11 = vld [vmem:[#allocation2 + $0x18] sm:$0xff]   ;;  %v295_v25 = vld [vmem:[%s738_s3] sm:$0x1]  ;;  %p586_p10 = scmp.ne.s32.totalorder %s376_s12, %s585_s13  ;;  %p591_p12 = scmp.lt.s32.totalorder %s585_s13, %s585_s13 }
  0x22   :  { %v252_v26 = vld [vmem:[%s737_s2] sm:$0x1] }
  0x23   :  { %482 = vmatpush3.bf16.msra.mxu0 %v534_v1  ;;  %p592_p13 = por %p591_p12, %p590_p11 }
  0x24   :  { %483 = vmatprep.subr.bf16.mxu0 %v535_v2 }
  0x25   :  { %p593_p0 = pnand %p592_p13, %p586_p10 }
  0x27   :  { %484 = vmatpush3.bf16.msra.mxu0 %v535_v2 }
  0x28   :  { %485 = vmatprep.subr.bf16.mxu0 %v536_v3 }
  0x2b   :  { %486 = vmatpush3.bf16.msra.mxu0 %v536_v3 }
  0x2c   :  { %487 = vmatprep.subr.bf16.mxu0 %v537_v5 }
  0x2f   :  { %488 = vmatpush3.bf16.msra.mxu0 %v537_v5 }
  0x30   :  { %489 = vmatprep.subr.bf16.mxu0 %v538_v6 }
  0x33   :  { %490 = vmatpush3.bf16.msra.mxu0 %v538_v6 }
  0x34   :  { %491 = vmatprep.subr.bf16.mxu0 %v539_v7 }
  0x37   :  { %492 = vmatpush3.bf16.msra.mxu0 %v539_v7 }
  0x38   :  { %493 = vmatprep.subr.bf16.mxu0 %v540_v8 }
  0x3b   :  { %494 = vmatpush3.bf16.msra.mxu0 %v540_v8 }
  0x3e   :  { %496 = vmatmul.mubr.bf16.vlgmr.msra.gmra.mxu0 %v542_v9 }
  0x3f   :  { %499 = vmatprep.mubr.bf16.mxu0 %v543_v10 }
  0x46   :  { %500 = vmatmul.mubr.bf16.gmra.mxu0 %v544_v11 }
  0xfe   :  { %v497_v13 = vpop.f32.mrf.mxu0 }
 0x100   :  { %v181_v14 = vpop.f32.mrf.mxu0 }
 0x102   :  { %v498_v15 = vpop.f32.mrf.mxu0 }
 0x103   :  { %v213_v16 = vpack.c.bf16 %v498_v15, %v497_v13 }
 0x104   :  { %v184_v17 = vpop.f32.mrf.mxu0 }
 0x105   :  { %454 = vst [vmem:[#allocation7 + $0x8] sm:$0xff] %v213_v16   ;;  %v212_v18 = vpack.c.bf16 %v184_v17, %v181_v14 }
 0x106   :  { %v501_v19 = vpop.f32.mrf.mxu0 }
 0x107   :  { %438 = vst [vmem:[#allocation7] sm:$0xff] %v212_v18  }
 0x108   :  { %v197_v20 = vpop.f32.mrf.mxu0 }
 0x10a   :  { %v502_v21 = vpop.f32.mrf.mxu0 }
 0x10b   :  { %v215_v22 = vpack.c.bf16 %v502_v21, %v501_v19 }
 0x10c   :  { %v200_v23 = vpop.f32.mrf.mxu0 }
 0x10d   :  { %456 = vst [vmem:[#allocation7 + $0x18] sm:$0xff] %v215_v22   ;;  %v214_v24 = vpack.c.bf16 %v200_v23, %v197_v20  ;;  %504 = vmatpush3.bf16.xpose.msra.mxu1 %v215_v22 }
 0x10e   :  { %505 = vmatprep.subr.bf16.mxu1 %v637_v12 }
 0x10f   :  { %455 = vst [vmem:[#allocation7 + $0x10] sm:$0xff] %v214_v24  }
 0x115   :  { %506 = vmatpush3.bf16.xpose.msra.mxu1 %v214_v24 }
 0x116   :  { %507 = vmatprep.subr.bf16.mxu1 %v637_v12 }
 0x11d   :  { %508 = vmatpush3.bf16.xpose.msra.mxu1 %v213_v16 }
 0x11e   :  { %509 = vmatprep.subr.bf16.mxu1 %v637_v12 }
 0x125   :  { %510 = vmatpush3.bf16.xpose.msra.mxu1 %v212_v18 }
 0x126   :  { %515 = vmatprep.subr.bf16.mxu1 %v295_v25 }
 0x12c   :  { %512 = vmatmul.mubr.bf16.vlgmr.msra.gmra.mxu1 %v252_v26 }
 0x12d   :  { %516 = vmatpush3.bf16.xpose.msra.mxu1 %v295_v25  ;;  %517 = vmatprep.mubr.bf16.mxu1 %v212_v18 }
 0x134   :  { %518 = vmatmul.mubr.bf16.vlgmr.msra.gmra.mxu1 %v213_v16 }
 0x135   :  { %521 = vmatprep.mubr.bf16.mxu1 %v214_v24 }
 0x13c   :  { %522 = vmatmul.mubr.bf16.gmra.mxu1 %v215_v22 }
 0x13d   :  { %596 = shalt.err (!%p593_p0)
}
 0x13e   :  { %381 = dma.vmem_to_hbm [thread:$0]  %s376_s12, 512, %s739_s4, [#allocation4], %s634_s24, %s634_s24, %s635_s25   ;;  %vm293_vm1 = vcmask 517120  }
 0x13f   :  { %s640_s14 = smov [#allocation8]  }
 0x140   :  { %s388_s15 = sshll.u32 %s640_s14, 4  ;;  %s389_s15 = int_to_ptr.vmem [resolvable:$true] %s388_s15 }
 0x141   :  { %s605_s16 = scalar_lea.vmem %s389_s15, 32  ;;  %p610_p2 = scmp.lt.s32.totalorder %s389_s15, %s389_s15 }
 0x142   :  { %p606_p1 = scmp.ne.s32.totalorder %s389_s15, %s605_s16  ;;  %p611_p3 = scmp.lt.s32.totalorder %s605_s16, %s605_s16 }
 0x144   :  { %p612_p4 = por %p611_p3, %p610_p2 }
 0x146   :  { %p613_p5 = pnand %p612_p4, %p606_p1 }
 0x1ec   :  { %v287_v27 = vpop.f32.mrf.mxu1 }
 0x1ed   :  { %294 = vst.msk [vmem:[#allocation8] sm:$0x3] %vm293_vm1, %v287_v27 }
 0x1ee   :  { %v513_v28 = vpop.f32.mrf.mxu1 }
 0x1ef   :  { %616 = shalt.err (!%p613_p5)
}
 0x1f0   :  { %391 = dma.vmem_to_hbm [thread:$0]  %s389_s15, 32, %s740_s5, [#allocation9]   ;;  %v290_v29 = vpop.f32.mrf.mxu1  ;;  %vm361_vm2 = vcmask 15360  }
 0x1f2   :  { %v514_v30 = vpop.f32.mrf.mxu1 }
 0x1f4   :  { %v519_v31 = vpop.f32.mrf.mxu1 }
 0x1f5   :  { %364 = vst.msk [vmem:[%s741_s6 + $0x10] sm:$0xff] %vm361_vm2, %v519_v31 }
 0x1f6   :  { %v330_v32 = vpop.f32.mrf.mxu1 }
 0x1f7   :  { %362 = vst.msk [vmem:[%s741_s6] sm:$0xff] %vm361_vm2, %v330_v32 }
 0x1f8   :  { %v520_v33 = vpop.f32.mrf.mxu1 }
 0x1f9   :  { %365 = vst.msk [vmem:[%s741_s6 + $0x18] sm:$0xff] %vm361_vm2, %v520_v33 }
 0x1fa   :  { %v333_v34 = vpop.f32.mrf.mxu1 }
 0x1fb   :  { %363 = vst.msk [vmem:[%s741_s6 + $0x8] sm:$0xff] %vm361_vm2, %v333_v34 }
 0x1fc   :  { %v523_v35 = vpop.f32.mrf.mxu1 }
 0x1fd   :  { %368 = vst.msk [vmem:[%s741_s6 + $0x30] sm:$0xff] %vm361_vm2, %v523_v35 }
 0x1fe   :  { %v346_v36 = vpop.f32.mrf.mxu1 }
 0x1ff   :  { %366 = vst.msk [vmem:[%s741_s6 + $0x20] sm:$0xff] %vm361_vm2, %v346_v36 }
 0x200   :  { %v524_v37 = vpop.f32.mrf.mxu1 }
 0x201   :  { %369 = vst.msk [vmem:[%s741_s6 + $0x38] sm:$0xff] %vm361_vm2, %v524_v37 }
 0x202   :  { %v349_v38 = vpop.f32.mrf.mxu1 }
 0x203   :  { %367 = vst.msk [vmem:[%s741_s6 + $0x28] sm:$0xff] %vm361_vm2, %v349_v38 }
 0x204   :  { %629 = dma.done.wait [#allocation4], 512  }
 0x205   :  { %630 = vsyncadd [#allocation4], 4294966784 }
 0x206   :  { %631 = dma.done.wait [#allocation9], 32  }
 0x207   :  { %632 = vsyncadd [#allocation9], 4294967264 }
 0x208   :  { %402 = vsyncpa [#allocation3], 1 }
 0x209   :  { %403 = vsyncpa [#allocation6], 1 }
 0x20a   :  { %404 = vsyncpa [#allocation4], 1 }
 0x20b   :  { %405 = vsyncpa [#allocation9], 1 }

</bundles_post_ra>
